<compile_context>
chip_gen: v6e
topology: v6e:2x2x1
jax: 0.10.0
libtpu: 0.0.40
codegen_flags: <defaults>
</compile_context>

<pallas_src>
import functools

import jax
import jax.numpy as jnp
from jax.experimental import pallas as pl
from jax.experimental.pallas import tpu as pltpu


def _dresblock_kernel(x_ref, mask_ref, w1sc_ref, b1_ref, bsc_ref, w2_ref,
                      b2_ref, o_ref, xcol_ref, *, W, NHW, C):
    """All operands are 2-D with the flattened N*H*W axis last (lane-dense).

    x_ref    : (C,  NHW)        input, channels zero-padded to C (= Cout)
    mask_ref : (9,  NHW)        f32 border-validity mask per 3x3 tap
    w1sc_ref : (2C, 10*C) bf16  block weights [[conv1_im2col, 0], [0, conv_sc]]
    w2_ref   : (C,  9*C)  bf16  conv2 im2col weights, columns ordered (dy,dx,c)
    b*_ref   : (C, 1)           biases (broadcast along lanes)
    o_ref    : (C,  NHW)        output
    xcol_ref : (10*C, NHW) f32  VMEM scratch: im2col column matrix (+ raw x)
    """
    bf16 = jnp.bfloat16

    def write_taps(inp):
        # Store the 9 masked, shifted taps of `inp` into scratch rows [0, 9*C).
        # Each store is a full (C=8)-row, NHW-lane aligned VMEM store.
        t = 0
        for dy in range(3):
            for dx in range(3):
                s = (dy - 1) * W + (dx - 1)            # flat shift of this tap
                if s == 0:
                    shifted = inp
                else:
                    # shifted[:, i] = inp[:, (i + s) % NHW]   (XLU lane rotate)
                    shifted = pltpu.roll(inp, shift=(-s) % NHW, axis=1)
                # mask kills out-of-image taps and any roll wrap-around.
                xcol_ref[t * C:(t + 1) * C, :] = shifted * mask_ref[t:t + 1, :]
                t += 1

    x = x_ref[...]                                     # (C, NHW) f32

    # ---- conv1 (3x3, pad 1) on relu(x)  +  1x1 shortcut on x, fused ----
    write_taps(jnp.maximum(x, 0.0))                    # rows [0, 9C): relu(x) taps
    xcol_ref[9 * C:10 * C, :] = x                      # rows [9C, 10C): raw x
    y = jnp.dot(w1sc_ref[...],
                xcol_ref[...].astype(bf16),
                preferred_element_type=jnp.float32)    # (2C, NHW)
    h1 = jnp.maximum(y[0:C, :] + b1_ref[...], 0.0)     # conv1 + bias + relu
    sc = y[C:2 * C, :] + bsc_ref[...]                  # shortcut + bias

    # ---- conv2 (3x3, pad 1) on relu(conv1) ----
    write_taps(h1)                                     # overwrite rows [0, 9C)
    h2 = jnp.dot(w2_ref[...],
                 xcol_ref[0:9 * C, :].astype(bf16),
                 preferred_element_type=jnp.float32) + b2_ref[...]

    o_ref[...] = h2 + sc                               # skip connection


def dresblock_forward(x_nchw, w1, b1, w2, b2, wsc, bsc):
    """x_nchw: (N, Cin, H, W) f32. Conv weights in PyTorch (Cout, Cin, kH, kW)."""
    N, CIN, H, W = x_nchw.shape
    COUT = w1.shape[0]
    NHW = N * H * W
    f32, bf16 = jnp.float32, jnp.bfloat16

    # Pad input channels up to Cout so every tap chunk is a full 8-sublane tile.
    # TODO(synk): generalize the scratch layout for configs where a padded Cin
    # would differ from Cout (here inc=4 <= outc=8 and outc % 8 == 0).
    assert COUT % 8 == 0 and CIN <= COUT
    CP = COUT

    # Channels -> sublanes, flattened N*H*W -> lanes (lane-dense, 512 % 128 == 0).
    # TODO(synk): keep activations in (C, NHW) layout across consecutive blocks
    # so these two per-call transposes only happen at graph boundaries.
    x_flat = jnp.transpose(x_nchw, (1, 0, 2, 3)).reshape(CIN, NHW).astype(f32)
    x_flat = jnp.pad(x_flat, ((0, CP - CIN), (0, 0)))            # (CP, NHW)

    # im2col weight matrices, column ordering (dy, dx, cin_padded).
    w1_mat = jnp.pad(jnp.transpose(w1, (0, 2, 3, 1)).astype(f32),
                     ((0, 0), (0, 0), (0, 0), (0, CP - CIN))
                     ).reshape(COUT, 9 * CP)
    w2_mat = jnp.transpose(w2, (0, 2, 3, 1)).reshape(COUT, 9 * COUT).astype(f32)
    wsc_p = jnp.pad(wsc[:, :, 0, 0].astype(f32),
                    ((0, 0), (0, CP - CIN)))                     # (COUT, CP)

    # Fused [conv1 | 1x1 shortcut] block-diagonal weights: (2*Cout, 10*CP).
    w1sc = jnp.zeros((2 * COUT, 10 * CP), f32)
    w1sc = w1sc.at[:COUT, :9 * CP].set(w1_mat)
    w1sc = w1sc.at[COUT:, 9 * CP:].set(wsc_p)

    b1_c = b1.reshape(COUT, 1).astype(f32)
    b2_c = b2.reshape(COUT, 1).astype(f32)
    bsc_c = bsc.reshape(COUT, 1).astype(f32)

    # Border-validity masks for the 9 taps (compile-time, shared by both convs).
    idx = jnp.arange(NHW, dtype=jnp.int32)
    wq = idx % W
    hq = (idx // W) % H
    rows = []
    for dy in range(3):
        for dx in range(3):
            oy, ox = dy - 1, dx - 1
            rows.append((hq + oy >= 0) & (hq + oy < H) &
                        (wq + ox >= 0) & (wq + ox < W))
    mask = jnp.stack(rows, axis=0).astype(f32)                   # (9, NHW)

    kernel = functools.partial(_dresblock_kernel, W=W, NHW=NHW, C=CP)

    # Whole batch in one grid step: working set (~200 KB) is far below VMEM on
    # all chips and amortizes per-step pipeline overhead.
    # TODO(synk): at larger N/H split a leading "parallel" grid axis to feed
    # both v7x TensorCores; at the current 2x4x16x16 size it is a wash.
    out = pl.pallas_call(
        kernel,
        out_shape=jax.ShapeDtypeStruct((COUT, NHW), f32),
        grid_spec=pltpu.PrefetchScalarGridSpec(
            num_scalar_prefetch=0,
            grid=(1,),
            in_specs=[
                pl.BlockSpec((CP, NHW), lambda i: (0, 0)),           # x
                pl.BlockSpec((9, NHW), lambda i: (0, 0)),            # masks
                pl.BlockSpec((2 * COUT, 10 * CP), lambda i: (0, 0)),  # w1|wsc
                pl.BlockSpec((COUT, 1), lambda i: (0, 0)),           # b1
                pl.BlockSpec((COUT, 1), lambda i: (0, 0)),           # bsc
                pl.BlockSpec((COUT, 9 * COUT), lambda i: (0, 0)),    # w2
                pl.BlockSpec((COUT, 1), lambda i: (0, 0)),           # b2
            ],
            out_specs=pl.BlockSpec((COUT, NHW), lambda i: (0, 0)),
            scratch_shapes=[pltpu.VMEM((10 * CP, NHW), jnp.float32)],
        ),
        compiler_params=pltpu.CompilerParams(
            dimension_semantics=("arbitrary",)),
    )(x_flat, mask, w1sc.astype(bf16), b1_c, bsc_c, w2_mat.astype(bf16), b2_c)

    # Back to NCHW.
    return jnp.transpose(out.reshape(COUT, N, H, W), (1, 0, 2, 3))


def spectral_normalize(w, key, n_iter=1, eps=1e-12):
    """One power-iteration spectral norm, like torch spectral_norm at forward."""
    w_mat = w.reshape(w.shape[0], -1)
    u = jax.random.normal(key, (w.shape[0],), dtype=jnp.float32)
    u = u / (jnp.linalg.norm(u) + eps)
    v = None
    for _ in range(n_iter):
        v = w_mat.T @ u
        v = v / (jnp.linalg.norm(v) + eps)
        u = w_mat @ v
        u = u / (jnp.linalg.norm(u) + eps)
    sigma = u @ (w_mat @ v)
    return w / sigma


def reference_forward(x, w1, b1, w2, b2, wsc, bsc):
    """Pure-JAX NCHW reference of the PyTorch forward (f32)."""
    relu = lambda t: jnp.maximum(t, 0.0)

    def conv(t, w, b, pad):
        y = jax.lax.conv_general_dilated(
            t, w, window_strides=(1, 1),
            padding=[(pad, pad), (pad, pad)],
            dimension_numbers=('NCHW', 'OIHW', 'NCHW'))
        return y + b[None, :, None, None]

    h = relu(x)
    h = conv(h, w1, b1, 1)
    h = relu(h)
    h = conv(h, w2, b2, 1)
    sc = conv(x, wsc, bsc, 0)
    return h + sc


if __name__ == "__main__":
    N, INC, OUTC, H, W = 2, 4, 8, 16, 16

    key = jax.random.PRNGKey(0)
    (k_x, k_w1, k_b1, k_w2, k_b2, k_wsc, k_bsc,
     k_u1, k_u2, k_u3) = jax.random.split(key, 10)

    x = jax.random.normal(k_x, (N, INC, H, W), dtype=jnp.float32)

    # Deterministic parameter init (shapes from the module's __init__).
    w1 = 0.1 * jax.random.normal(k_w1, (OUTC, INC, 3, 3), dtype=jnp.float32)
    b1 = 0.1 * jax.random.normal(k_b1, (OUTC,), dtype=jnp.float32)
    w2 = 0.1 * jax.random.normal(k_w2, (OUTC, OUTC, 3, 3), dtype=jnp.float32)
    b2 = 0.1 * jax.random.normal(k_b2, (OUTC,), dtype=jnp.float32)
    wsc = 0.1 * jax.random.normal(k_wsc, (OUTC, INC, 1, 1), dtype=jnp.float32)
    bsc = 0.1 * jax.random.normal(k_bsc, (OUTC,), dtype=jnp.float32)

    # use_SN=True: spectrally normalize conv1, conv2, conv_sc weights.
    # TODO(synk): torch persists the power-iteration vector u across calls;
    # here a fresh u is drawn (identical for a single forward).
    w1 = spectral_normalize(w1, k_u1)
    w2 = spectral_normalize(w2, k_u2)
    wsc = spectral_normalize(wsc, k_u3)

    out = dresblock_forward(x, w1, b1, w2, b2, wsc, bsc)
    out = jax.block_until_ready(out)

    ref = reference_forward(x, w1, b1, w2, b2, wsc, bsc)
    assert out.shape == (N, OUTC, H, W)
    # bf16 MXU operands (f32 accumulation) vs f32 reference -> looser tolerance.
    assert jnp.allclose(out, ref, atol=2e-2, rtol=2e-2), (
        float(jnp.max(jnp.abs(out - ref))))

    print("KERNEL_OK")
</pallas_src>

<mosaic_0001>
module attributes {stable_mosaic.version = 11 : i64} {
  func.func @_dresblock_kernel(%arg0: i32, %arg1: memref<8x512xf32, #tpu.memory_space<vmem>>, %arg2: memref<9x512xf32, #tpu.memory_space<vmem>>, %arg3: memref<16x80xbf16, #tpu.memory_space<vmem>>, %arg4: memref<8x1xf32, #tpu.memory_space<vmem>>, %arg5: memref<8x1xf32, #tpu.memory_space<vmem>>, %arg6: memref<8x72xbf16, #tpu.memory_space<vmem>>, %arg7: memref<8x1xf32, #tpu.memory_space<vmem>>, %arg8: memref<8x512xf32, #tpu.memory_space<vmem>>, %arg9: memref<80x512xf32, #tpu.memory_space<vmem>>) attributes {dimension_semantics = [#tpu.dimension_semantics<arbitrary>], iteration_bounds = array<i64: 1>, scalar_prefetch = 0 : i64, scratch_operands = 1 : i64, tpu.core_type = #tpu.core_type<tc>, window_params = [{pipeline_mode = #tpu.pipeline_mode<synchronous>, transform_indices = @transform_0, window_bounds = array<i64: 8, 512>}, {pipeline_mode = #tpu.pipeline_mode<synchronous>, transform_indices = @transform_1, window_bounds = array<i64: 9, 512>}, {pipeline_mode = #tpu.pipeline_mode<synchronous>, transform_indices = @transform_2, window_bounds = array<i64: 16, 80>}, {pipeline_mode = #tpu.pipeline_mode<synchronous>, transform_indices = @transform_3, window_bounds = array<i64: 8, 1>}, {pipeline_mode = #tpu.pipeline_mode<synchronous>, transform_indices = @transform_4, window_bounds = array<i64: 8, 1>}, {pipeline_mode = #tpu.pipeline_mode<synchronous>, transform_indices = @transform_5, window_bounds = array<i64: 8, 72>}, {pipeline_mode = #tpu.pipeline_mode<synchronous>, transform_indices = @transform_6, window_bounds = array<i64: 8, 1>}, {pipeline_mode = #tpu.pipeline_mode<synchronous>, transform_indices = @transform_7, window_bounds = array<i64: 8, 512>}]} {
    %c0 = arith.constant 0 : index
    %c0_0 = arith.constant 0 : index
    %0 = vector.load %arg1[%c0, %c0_0] : memref<8x512xf32, #tpu.memory_space<vmem>>, vector<8x512xf32>
    %cst = arith.constant 0.000000e+00 : f32
    %1 = vector.broadcast %cst : f32 to vector<8x512xf32>
    %2 = arith.maximumf %0, %1 : vector<8x512xf32>
    %c17_i32 = arith.constant 17 : i32
    %3 = tpu.dynamic_rotate %2 by %c17_i32 dim 1 : vector<8x512xf32>, i32 -> vector<8x512xf32>
    %c0_1 = arith.constant 0 : index
    %c0_2 = arith.constant 0 : index
    %4 = vector.load %arg2[%c0_1, %c0_2] : memref<9x512xf32, #tpu.memory_space<vmem>>, vector<1x512xf32>
    %5 = vector.broadcast %4 : vector<1x512xf32> to vector<8x512xf32>
    %6 = arith.mulf %3, %5 : vector<8x512xf32>
    %c0_3 = arith.constant 0 : index
    %c0_4 = arith.constant 0 : index
    %7 = vector.load %arg9[%c0_3, %c0_4] : memref<80x512xf32, #tpu.memory_space<vmem>>, vector<8x512xf32>
    tpu.vector_store %arg9[%c0_3, %c0_4], %6 {strides = array<i32>} : memref<80x512xf32, #tpu.memory_space<vmem>>, vector<8x512xf32>,
    %c16_i32 = arith.constant 16 : i32
    %8 = tpu.dynamic_rotate %2 by %c16_i32 dim 1 : vector<8x512xf32>, i32 -> vector<8x512xf32>
    %c1 = arith.constant 1 : index
    %c0_5 = arith.constant 0 : index
    %9 = vector.load %arg2[%c1, %c0_5] : memref<9x512xf32, #tpu.memory_space<vmem>>, vector<1x512xf32>
    %10 = vector.broadcast %9 : vector<1x512xf32> to vector<8x512xf32>
    %11 = arith.mulf %8, %10 : vector<8x512xf32>
    %c8 = arith.constant 8 : index
    %c0_6 = arith.constant 0 : index
    %12 = vector.load %arg9[%c8, %c0_6] : memref<80x512xf32, #tpu.memory_space<vmem>>, vector<8x512xf32>
    tpu.vector_store %arg9[%c8, %c0_6], %11 {strides = array<i32>} : memref<80x512xf32, #tpu.memory_space<vmem>>, vector<8x512xf32>,
    %c15_i32 = arith.constant 15 : i32
    %13 = tpu.dynamic_rotate %2 by %c15_i32 dim 1 : vector<8x512xf32>, i32 -> vector<8x512xf32>
    %c2 = arith.constant 2 : index
    %c0_7 = arith.constant 0 : index
    %14 = vector.load %arg2[%c2, %c0_7] : memref<9x512xf32, #tpu.memory_space<vmem>>, vector<1x512xf32>
    %15 = vector.broadcast %14 : vector<1x512xf32> to vector<8x512xf32>
    %16 = arith.mulf %13, %15 : vector<8x512xf32>
    %c16 = arith.constant 16 : index
    %c0_8 = arith.constant 0 : index
    %17 = vector.load %arg9[%c16, %c0_8] : memref<80x512xf32, #tpu.memory_space<vmem>>, vector<8x512xf32>
    tpu.vector_store %arg9[%c16, %c0_8], %16 {strides = array<i32>} : memref<80x512xf32, #tpu.memory_space<vmem>>, vector<8x512xf32>,
    %c1_i32 = arith.constant 1 : i32
    %18 = tpu.dynamic_rotate %2 by %c1_i32 dim 1 : vector<8x512xf32>, i32 -> vector<8x512xf32>
    %c3 = arith.constant 3 : index
    %c0_9 = arith.constant 0 : index
    %19 = vector.load %arg2[%c3, %c0_9] : memref<9x512xf32, #tpu.memory_space<vmem>>, vector<1x512xf32>
    %20 = vector.broadcast %19 : vector<1x512xf32> to vector<8x512xf32>
    %21 = arith.mulf %18, %20 : vector<8x512xf32>
    %c24 = arith.constant 24 : index
    %c0_10 = arith.constant 0 : index
    %22 = vector.load %arg9[%c24, %c0_10] : memref<80x512xf32, #tpu.memory_space<vmem>>, vector<8x512xf32>
    tpu.vector_store %arg9[%c24, %c0_10], %21 {strides = array<i32>} : memref<80x512xf32, #tpu.memory_space<vmem>>, vector<8x512xf32>,
    %c4 = arith.constant 4 : index
    %c0_11 = arith.constant 0 : index
    %23 = vector.load %arg2[%c4, %c0_11] : memref<9x512xf32, #tpu.memory_space<vmem>>, vector<1x512xf32>
    %24 = vector.broadcast %23 : vector<1x512xf32> to vector<8x512xf32>
    %25 = arith.mulf %2, %24 : vector<8x512xf32>
    %c32 = arith.constant 32 : index
    %c0_12 = arith.constant 0 : index
    %26 = vector.load %arg9[%c32, %c0_12] : memref<80x512xf32, #tpu.memory_space<vmem>>, vector<8x512xf32>
    tpu.vector_store %arg9[%c32, %c0_12], %25 {strides = array<i32>} : memref<80x512xf32, #tpu.memory_space<vmem>>, vector<8x512xf32>,
    %c511_i32 = arith.constant 511 : i32
    %27 = tpu.dynamic_rotate %2 by %c511_i32 dim 1 : vector<8x512xf32>, i32 -> vector<8x512xf32>
    %c5 = arith.constant 5 : index
    %c0_13 = arith.constant 0 : index
    %28 = vector.load %arg2[%c5, %c0_13] : memref<9x512xf32, #tpu.memory_space<vmem>>, vector<1x512xf32>
    %29 = vector.broadcast %28 : vector<1x512xf32> to vector<8x512xf32>
    %30 = arith.mulf %27, %29 : vector<8x512xf32>
    %c40 = arith.constant 40 : index
    %c0_14 = arith.constant 0 : index
    %31 = vector.load %arg9[%c40, %c0_14] : memref<80x512xf32, #tpu.memory_space<vmem>>, vector<8x512xf32>
    tpu.vector_store %arg9[%c40, %c0_14], %30 {strides = array<i32>} : memref<80x512xf32, #tpu.memory_space<vmem>>, vector<8x512xf32>,
    %c497_i32 = arith.constant 497 : i32
    %32 = tpu.dynamic_rotate %2 by %c497_i32 dim 1 : vector<8x512xf32>, i32 -> vector<8x512xf32>
    %c6 = arith.constant 6 : index
    %c0_15 = arith.constant 0 : index
    %33 = vector.load %arg2[%c6, %c0_15] : memref<9x512xf32, #tpu.memory_space<vmem>>, vector<1x512xf32>
    %34 = vector.broadcast %33 : vector<1x512xf32> to vector<8x512xf32>
    %35 = arith.mulf %32, %34 : vector<8x512xf32>
    %c48 = arith.constant 48 : index
    %c0_16 = arith.constant 0 : index
    %36 = vector.load %arg9[%c48, %c0_16] : memref<80x512xf32, #tpu.memory_space<vmem>>, vector<8x512xf32>
    tpu.vector_store %arg9[%c48, %c0_16], %35 {strides = array<i32>} : memref<80x512xf32, #tpu.memory_space<vmem>>, vector<8x512xf32>,
    %c496_i32 = arith.constant 496 : i32
    %37 = tpu.dynamic_rotate %2 by %c496_i32 dim 1 : vector<8x512xf32>, i32 -> vector<8x512xf32>
    %c7 = arith.constant 7 : index
    %c0_17 = arith.constant 0 : index
    %38 = vector.load %arg2[%c7, %c0_17] : memref<9x512xf32, #tpu.memory_space<vmem>>, vector<1x512xf32>
    %39 = vector.broadcast %38 : vector<1x512xf32> to vector<8x512xf32>
    %40 = arith.mulf %37, %39 : vector<8x512xf32>
    %c56 = arith.constant 56 : index
    %c0_18 = arith.constant 0 : index
    %41 = vector.load %arg9[%c56, %c0_18] : memref<80x512xf32, #tpu.memory_space<vmem>>, vector<8x512xf32>
    tpu.vector_store %arg9[%c56, %c0_18], %40 {strides = array<i32>} : memref<80x512xf32, #tpu.memory_space<vmem>>, vector<8x512xf32>,
    %c495_i32 = arith.constant 495 : i32
    %42 = tpu.dynamic_rotate %2 by %c495_i32 dim 1 : vector<8x512xf32>, i32 -> vector<8x512xf32>
    %c8_19 = arith.constant 8 : index
    %c0_20 = arith.constant 0 : index
    %43 = vector.load %arg2[%c8_19, %c0_20] : memref<9x512xf32, #tpu.memory_space<vmem>>, vector<1x512xf32>
    %44 = vector.broadcast %43 : vector<1x512xf32> to vector<8x512xf32>
    %45 = arith.mulf %42, %44 : vector<8x512xf32>
    %c64 = arith.constant 64 : index
    %c0_21 = arith.constant 0 : index
    %46 = vector.load %arg9[%c64, %c0_21] : memref<80x512xf32, #tpu.memory_space<vmem>>, vector<8x512xf32>
    tpu.vector_store %arg9[%c64, %c0_21], %45 {strides = array<i32>} : memref<80x512xf32, #tpu.memory_space<vmem>>, vector<8x512xf32>,
    %c72 = arith.constant 72 : index
    %c0_22 = arith.constant 0 : index
    %47 = vector.load %arg9[%c72, %c0_22] : memref<80x512xf32, #tpu.memory_space<vmem>>, vector<8x512xf32>
    tpu.vector_store %arg9[%c72, %c0_22], %0 {strides = array<i32>} : memref<80x512xf32, #tpu.memory_space<vmem>>, vector<8x512xf32>,
    %c0_23 = arith.constant 0 : index
    %c0_24 = arith.constant 0 : index
    %48 = vector.load %arg3[%c0_23, %c0_24] : memref<16x80xbf16, #tpu.memory_space<vmem>>, vector<16x80xbf16>
    %c0_25 = arith.constant 0 : index
    %c0_26 = arith.constant 0 : index
    %49 = vector.load %arg9[%c0_25, %c0_26] : memref<80x512xf32, #tpu.memory_space<vmem>>, vector<80x512xf32>
    %50 = arith.truncf %49 : vector<80x512xf32> to vector<80x512xbf16>
    %cst_27 = arith.constant dense<0.000000e+00> : vector<16x512xf32>
    %51 = tpu.matmul %48, %50, %cst_27 {dimension_numbers = #tpu.dot_dimension_numbers<[1], [0], [0], [1], [0, 0, 1, 1], [], []>} : vector<16x80xbf16>, vector<80x512xbf16>, vector<16x512xf32> -> vector<16x512xf32>
    %52 = vector.extract_strided_slice %51 {offsets = [0, 0], sizes = [8, 512], strides = [1, 1]} : vector<16x512xf32> to vector<8x512xf32>
    %c0_28 = arith.constant 0 : index
    %c0_29 = arith.constant 0 : index
    %53 = vector.load %arg4[%c0_28, %c0_29] : memref<8x1xf32, #tpu.memory_space<vmem>>, vector<8x1xf32>
    %54 = vector.broadcast %53 : vector<8x1xf32> to vector<8x512xf32>
    %55 = arith.addf %52, %54 : vector<8x512xf32>
    %cst_30 = arith.constant 0.000000e+00 : f32
    %56 = vector.broadcast %cst_30 : f32 to vector<8x512xf32>
    %57 = arith.maximumf %55, %56 : vector<8x512xf32>
    %58 = vector.extract_strided_slice %51 {offsets = [8, 0], sizes = [8, 512], strides = [1, 1]} : vector<16x512xf32> to vector<8x512xf32>
    %c0_31 = arith.constant 0 : index
    %c0_32 = arith.constant 0 : index
    %59 = vector.load %arg5[%c0_31, %c0_32] : memref<8x1xf32, #tpu.memory_space<vmem>>, vector<8x1xf32>
    %60 = vector.broadcast %59 : vector<8x1xf32> to vector<8x512xf32>
    %61 = arith.addf %58, %60 : vector<8x512xf32>
    %c17_i32_33 = arith.constant 17 : i32
    %62 = tpu.dynamic_rotate %57 by %c17_i32_33 dim 1 : vector<8x512xf32>, i32 -> vector<8x512xf32>
    %c0_34 = arith.constant 0 : index
    %c0_35 = arith.constant 0 : index
    %63 = vector.load %arg2[%c0_34, %c0_35] : memref<9x512xf32, #tpu.memory_space<vmem>>, vector<1x512xf32>
    %64 = vector.broadcast %63 : vector<1x512xf32> to vector<8x512xf32>
    %65 = arith.mulf %62, %64 : vector<8x512xf32>
    %c0_36 = arith.constant 0 : index
    %c0_37 = arith.constant 0 : index
    %66 = vector.load %arg9[%c0_36, %c0_37] : memref<80x512xf32, #tpu.memory_space<vmem>>, vector<8x512xf32>
    tpu.vector_store %arg9[%c0_36, %c0_37], %65 {strides = array<i32>} : memref<80x512xf32, #tpu.memory_space<vmem>>, vector<8x512xf32>,
    %c16_i32_38 = arith.constant 16 : i32
    %67 = tpu.dynamic_rotate %57 by %c16_i32_38 dim 1 : vector<8x512xf32>, i32 -> vector<8x512xf32>
    %c1_39 = arith.constant 1 : index
    %c0_40 = arith.constant 0 : index
    %68 = vector.load %arg2[%c1_39, %c0_40] : memref<9x512xf32, #tpu.memory_space<vmem>>, vector<1x512xf32>
    %69 = vector.broadcast %68 : vector<1x512xf32> to vector<8x512xf32>
    %70 = arith.mulf %67, %69 : vector<8x512xf32>
    %c8_41 = arith.constant 8 : index
    %c0_42 = arith.constant 0 : index
    %71 = vector.load %arg9[%c8_41, %c0_42] : memref<80x512xf32, #tpu.memory_space<vmem>>, vector<8x512xf32>
    tpu.vector_store %arg9[%c8_41, %c0_42], %70 {strides = array<i32>} : memref<80x512xf32, #tpu.memory_space<vmem>>, vector<8x512xf32>,
    %c15_i32_43 = arith.constant 15 : i32
    %72 = tpu.dynamic_rotate %57 by %c15_i32_43 dim 1 : vector<8x512xf32>, i32 -> vector<8x512xf32>
    %c2_44 = arith.constant 2 : index
    %c0_45 = arith.constant 0 : index
    %73 = vector.load %arg2[%c2_44, %c0_45] : memref<9x512xf32, #tpu.memory_space<vmem>>, vector<1x512xf32>
    %74 = vector.broadcast %73 : vector<1x512xf32> to vector<8x512xf32>
    %75 = arith.mulf %72, %74 : vector<8x512xf32>
    %c16_46 = arith.constant 16 : index
    %c0_47 = arith.constant 0 : index
    %76 = vector.load %arg9[%c16_46, %c0_47] : memref<80x512xf32, #tpu.memory_space<vmem>>, vector<8x512xf32>
    tpu.vector_store %arg9[%c16_46, %c0_47], %75 {strides = array<i32>} : memref<80x512xf32, #tpu.memory_space<vmem>>, vector<8x512xf32>,
    %c1_i32_48 = arith.constant 1 : i32
    %77 = tpu.dynamic_rotate %57 by %c1_i32_48 dim 1 : vector<8x512xf32>, i32 -> vector<8x512xf32>
    %c3_49 = arith.constant 3 : index
    %c0_50 = arith.constant 0 : index
    %78 = vector.load %arg2[%c3_49, %c0_50] : memref<9x512xf32, #tpu.memory_space<vmem>>, vector<1x512xf32>
    %79 = vector.broadcast %78 : vector<1x512xf32> to vector<8x512xf32>
    %80 = arith.mulf %77, %79 : vector<8x512xf32>
    %c24_51 = arith.constant 24 : index
    %c0_52 = arith.constant 0 : index
    %81 = vector.load %arg9[%c24_51, %c0_52] : memref<80x512xf32, #tpu.memory_space<vmem>>, vector<8x512xf32>
    tpu.vector_store %arg9[%c24_51, %c0_52], %80 {strides = array<i32>} : memref<80x512xf32, #tpu.memory_space<vmem>>, vector<8x512xf32>,
    %c4_53 = arith.constant 4 : index
    %c0_54 = arith.constant 0 : index
    %82 = vector.load %arg2[%c4_53, %c0_54] : memref<9x512xf32, #tpu.memory_space<vmem>>, vector<1x512xf32>
    %83 = vector.broadcast %82 : vector<1x512xf32> to vector<8x512xf32>
    %84 = arith.mulf %57, %83 : vector<8x512xf32>
    %c32_55 = arith.constant 32 : index
    %c0_56 = arith.constant 0 : index
    %85 = vector.load %arg9[%c32_55, %c0_56] : memref<80x512xf32, #tpu.memory_space<vmem>>, vector<8x512xf32>
    tpu.vector_store %arg9[%c32_55, %c0_56], %84 {strides = array<i32>} : memref<80x512xf32, #tpu.memory_space<vmem>>, vector<8x512xf32>,
    %c511_i32_57 = arith.constant 511 : i32
    %86 = tpu.dynamic_rotate %57 by %c511_i32_57 dim 1 : vector<8x512xf32>, i32 -> vector<8x512xf32>
    %c5_58 = arith.constant 5 : index
    %c0_59 = arith.constant 0 : index
    %87 = vector.load %arg2[%c5_58, %c0_59] : memref<9x512xf32, #tpu.memory_space<vmem>>, vector<1x512xf32>
    %88 = vector.broadcast %87 : vector<1x512xf32> to vector<8x512xf32>
    %89 = arith.mulf %86, %88 : vector<8x512xf32>
    %c40_60 = arith.constant 40 : index
    %c0_61 = arith.constant 0 : index
    %90 = vector.load %arg9[%c40_60, %c0_61] : memref<80x512xf32, #tpu.memory_space<vmem>>, vector<8x512xf32>
    tpu.vector_store %arg9[%c40_60, %c0_61], %89 {strides = array<i32>} : memref<80x512xf32, #tpu.memory_space<vmem>>, vector<8x512xf32>,
    %c497_i32_62 = arith.constant 497 : i32
    %91 = tpu.dynamic_rotate %57 by %c497_i32_62 dim 1 : vector<8x512xf32>, i32 -> vector<8x512xf32>
    %c6_63 = arith.constant 6 : index
    %c0_64 = arith.constant 0 : index
    %92 = vector.load %arg2[%c6_63, %c0_64] : memref<9x512xf32, #tpu.memory_space<vmem>>, vector<1x512xf32>
    %93 = vector.broadcast %92 : vector<1x512xf32> to vector<8x512xf32>
    %94 = arith.mulf %91, %93 : vector<8x512xf32>
    %c48_65 = arith.constant 48 : index
    %c0_66 = arith.constant 0 : index
    %95 = vector.load %arg9[%c48_65, %c0_66] : memref<80x512xf32, #tpu.memory_space<vmem>>, vector<8x512xf32>
    tpu.vector_store %arg9[%c48_65, %c0_66], %94 {strides = array<i32>} : memref<80x512xf32, #tpu.memory_space<vmem>>, vector<8x512xf32>,
    %c496_i32_67 = arith.constant 496 : i32
    %96 = tpu.dynamic_rotate %57 by %c496_i32_67 dim 1 : vector<8x512xf32>, i32 -> vector<8x512xf32>
    %c7_68 = arith.constant 7 : index
    %c0_69 = arith.constant 0 : index
    %97 = vector.load %arg2[%c7_68, %c0_69] : memref<9x512xf32, #tpu.memory_space<vmem>>, vector<1x512xf32>
    %98 = vector.broadcast %97 : vector<1x512xf32> to vector<8x512xf32>
    %99 = arith.mulf %96, %98 : vector<8x512xf32>
    %c56_70 = arith.constant 56 : index
    %c0_71 = arith.constant 0 : index
    %100 = vector.load %arg9[%c56_70, %c0_71] : memref<80x512xf32, #tpu.memory_space<vmem>>, vector<8x512xf32>
    tpu.vector_store %arg9[%c56_70, %c0_71], %99 {strides = array<i32>} : memref<80x512xf32, #tpu.memory_space<vmem>>, vector<8x512xf32>,
    %c495_i32_72 = arith.constant 495 : i32
    %101 = tpu.dynamic_rotate %57 by %c495_i32_72 dim 1 : vector<8x512xf32>, i32 -> vector<8x512xf32>
    %c8_73 = arith.constant 8 : index
    %c0_74 = arith.constant 0 : index
    %102 = vector.load %arg2[%c8_73, %c0_74] : memref<9x512xf32, #tpu.memory_space<vmem>>, vector<1x512xf32>
    %103 = vector.broadcast %102 : vector<1x512xf32> to vector<8x512xf32>
    %104 = arith.mulf %101, %103 : vector<8x512xf32>
    %c64_75 = arith.constant 64 : index
    %c0_76 = arith.constant 0 : index
    %105 = vector.load %arg9[%c64_75, %c0_76] : memref<80x512xf32, #tpu.memory_space<vmem>>, vector<8x512xf32>
    tpu.vector_store %arg9[%c64_75, %c0_76], %104 {strides = array<i32>} : memref<80x512xf32, #tpu.memory_space<vmem>>, vector<8x512xf32>,
    %c0_77 = arith.constant 0 : index
    %c0_78 = arith.constant 0 : index
    %106 = vector.load %arg6[%c0_77, %c0_78] : memref<8x72xbf16, #tpu.memory_space<vmem>>, vector<8x72xbf16>
    %c0_79 = arith.constant 0 : index
    %c0_80 = arith.constant 0 : index
    %107 = vector.load %arg9[%c0_79, %c0_80] : memref<80x512xf32, #tpu.memory_space<vmem>>, vector<72x512xf32>
    %108 = arith.truncf %107 : vector<72x512xf32> to vector<72x512xbf16>
    %cst_81 = arith.constant dense<0.000000e+00> : vector<8x512xf32>
    %109 = tpu.matmul %106, %108, %cst_81 {dimension_numbers = #tpu.dot_dimension_numbers<[1], [0], [0], [1], [0, 0, 1, 1], [], []>} : vector<8x72xbf16>, vector<72x512xbf16>, vector<8x512xf32> -> vector<8x512xf32>
    %c0_82 = arith.constant 0 : index
    %c0_83 = arith.constant 0 : index
    %110 = vector.load %arg7[%c0_82, %c0_83] : memref<8x1xf32, #tpu.memory_space<vmem>>, vector<8x1xf32>
    %111 = vector.broadcast %110 : vector<8x1xf32> to vector<8x512xf32>
    %112 = arith.addf %109, %111 : vector<8x512xf32>
    %113 = arith.addf %112, %61 : vector<8x512xf32>
    %c0_84 = arith.constant 0 : index
    %c0_85 = arith.constant 0 : index
    %114 = vector.load %arg8[%c0_84, %c0_85] : memref<8x512xf32, #tpu.memory_space<vmem>>, vector<8x512xf32>
    tpu.vector_store %arg8[%c0_84, %c0_85], %113 {strides = array<i32>} : memref<8x512xf32, #tpu.memory_space<vmem>>, vector<8x512xf32>,
    return
  }
  func.func @transform_0(%arg0: i32) -> (i32, i32) {
    %c0_i32 = arith.constant 0 : i32
    %c0_i32_0 = arith.constant 0 : i32
    %c0_i32_1 = arith.constant 0 : i32
    return %c0_i32, %c0_i32_0 : i32, i32
  }
  func.func @transform_1(%arg0: i32) -> (i32, i32) {
    %c0_i32 = arith.constant 0 : i32
    %c0_i32_0 = arith.constant 0 : i32
    %c0_i32_1 = arith.constant 0 : i32
    return %c0_i32, %c0_i32_0 : i32, i32
  }
  func.func @transform_2(%arg0: i32) -> (i32, i32) {
    %c0_i32 = arith.constant 0 : i32
    %c0_i32_0 = arith.constant 0 : i32
    %c0_i32_1 = arith.constant 0 : i32
    return %c0_i32, %c0_i32_0 : i32, i32
  }
  func.func @transform_3(%arg0: i32) -> (i32, i32) {
    %c0_i32 = arith.constant 0 : i32
    %c0_i32_0 = arith.constant 0 : i32
    %c0_i32_1 = arith.constant 0 : i32
    return %c0_i32, %c0_i32_0 : i32, i32
  }
  func.func @transform_4(%arg0: i32) -> (i32, i32) {
    %c0_i32 = arith.constant 0 : i32
    %c0_i32_0 = arith.constant 0 : i32
    %c0_i32_1 = arith.constant 0 : i32
    return %c0_i32, %c0_i32_0 : i32, i32
  }
  func.func @transform_5(%arg0: i32) -> (i32, i32) {
    %c0_i32 = arith.constant 0 : i32
    %c0_i32_0 = arith.constant 0 : i32
    %c0_i32_1 = arith.constant 0 : i32
    return %c0_i32, %c0_i32_0 : i32, i32
  }
  func.func @transform_6(%arg0: i32) -> (i32, i32) {
    %c0_i32 = arith.constant 0 : i32
    %c0_i32_0 = arith.constant 0 : i32
    %c0_i32_1 = arith.constant 0 : i32
    return %c0_i32, %c0_i32_0 : i32, i32
  }
  func.func @transform_7(%arg0: i32) -> (i32, i32) {
    %c0_i32 = arith.constant 0 : i32
    %c0_i32_0 = arith.constant 0 : i32
    %c0_i32_1 = arith.constant 0 : i32
    return %c0_i32, %c0_i32_0 : i32, i32
  }
}

</mosaic_0001>

<bundles_post_ra>
// kernel: tpu_custom_call.1
= control target key start
LH: loop header
LB: loop body
LE: loop exit
PB: predicated region body
PF: predicated region fallthrough
CT: control target
= control target key end

     0   :  { %12 = vsyncpa [#allocation4], 0  ;;  %s1747_s0 = inlined_call_operand.hbm [shape: f32[8,512], index: 0, kind: input, shape index: {}]   ;;  %s1748_s1 = inlined_call_operand.hbm [shape: f32[9,512], index: 1, kind: input, shape index: {}]   ;;  %s1749_s2 = inlined_call_operand.vmem [shape: bf16[16,80], index: 2, kind: input, shape index: {}]   ;;  %s1750_s3 = inlined_call_operand.vmem [shape: f32[8,1], index: 3, kind: input, shape index: {}]   ;;  %s1751_s4 = inlined_call_operand.vmem [shape: f32[8,1], index: 4, kind: input, shape index: {}]   ;;  %s1752_s5 = inlined_call_operand.vmem [shape: bf16[8,72], index: 5, kind: input, shape index: {}]   ;;  %s1753_s6 = inlined_call_operand.vmem [shape: f32[8,1], index: 6, kind: input, shape index: {}]   ;;  %s1754_s7 = inlined_call_operand.hbm [shape: f32[8,512], index: 7, kind: output, shape index: {}]  }
   0x1   :  { %13 = vsyncpa [#allocation7], 0 }
   0x2   :  { %14 = vsyncpa [#allocation5], 0  ;;  %s1273_s24 = smov [#allocation3]   ;;  %s1274_s26 = smov [#allocation6]  }
   0x3   :  { %s21_s25 = sshll.u32 %s1273_s24, 4  ;;  %s30_s27 = sshll.u32 %s1274_s26, 4  ;;  %s22_s25 = int_to_ptr.vmem [resolvable:$true] %s21_s25  ;;  %s31_s27 = int_to_ptr.vmem [resolvable:$true] %s30_s27 }
   0x4   :  { %s1215_s28 = scalar_lea.vmem %s22_s25, 512  ;;  %p1220_p1 = scmp.lt.s32.totalorder %s22_s25, %s22_s25 }
   0x5   :  { %p1216_p0 = scmp.ne.s32.totalorder %s22_s25, %s1215_s28  ;;  %p1221_p2 = scmp.lt.s32.totalorder %s1215_s28, %s1215_s28 }
   0x7   :  { %p1222_p3 = por %p1221_p2, %p1220_p1 }
   0x9   :  { %p1223_p4 = pnand %p1222_p3, %p1216_p0 }
   0xb   :  { %1226 = shalt.err (!%p1223_p4)
}
   0xc   :  { %24 = dma.hbm_to_vmem [thread:$0]  %s1747_s0, 512, %s22_s25, [#allocation4]  }
   0xd   :  { %s1235_s8 = scalar_lea.vmem %s31_s27, 1024  ;;  %p1240_p6 = scmp.lt.s32.totalorder %s31_s27, %s31_s27 }
   0xe   :  { %p1236_p5 = scmp.ne.s32.totalorder %s31_s27, %s1235_s8  ;;  %p1241_p7 = scmp.lt.s32.totalorder %s1235_s8, %s1235_s8 }
  0x10   :  { %p1242_p8 = por %p1241_p7, %p1240_p6 }
  0x12   :  { %p1243_p9 = pnand %p1242_p8, %p1236_p5 }
  0x14   :  { %1246 = shalt.err (!%p1243_p9)
}
  0x15   :  { %s1275_s9 = smov 512   ;;  %s1276_s10 = smov 32  }
  0x16   :  { %36 = dma.hbm_to_vmem [thread:$0]  %s1748_s1, 1024, %s31_s27, [#allocation7], %s1275_s9, %s1275_s9, %s1276_s10  }
  0x17   :  { %1267 = dma.done.wait [#allocation4], 512  }
  0x18   :  { %1268 = vsyncadd [#allocation4], 4294966784 }
  0x19   :  { %1269 = dma.done.wait [#allocation7], 1024  }
  0x1a   :  { %1270 = vsyncadd [#allocation7], 4294966272  ;;  %v1333_v0 = vld [vmem:[#allocation3 + $0x10] sm:$0xff]  ;;  %v1335_v1 = vld [vmem:[#allocation3] sm:$0xff]  ;;  %s1277_s0 = smov 111   ;;  %s1278_s1 = smov 113   ;;  %v70_v10 = vlaneseq }
  0x1b   :  { %v1337_v2 = vld [vmem:[#allocation3 + $0x18] sm:$0xff]  ;;  %v1340_v3 = vmax.f32 %v1333_v0, 0.0  ;;  %v1343_v4 = vmax.f32 %v1335_v1, 0.0  ;;  %v1345_v5 = vld [vmem:[#allocation3 + $0x8] sm:$0xff]  ;;  %s1279_s13 = smov 112   ;;  %s1280_s14 = smov 127  }
  0x1c   :  { %v1352_v6 = vmax.f32 %v1337_v2, 0.0  ;;  %v1355_v7 = vmax.f32 %v1345_v5, 0.0  ;;  %s1281_s15 = smov 15   ;;  %s1282_s16 = smov 1   ;;  %v1284_v8 = vmov 0   ;;  %v607_v9 = vld [vmem:[%s1750_s3] sm:$0xff] }
  0x1d   :  { %406 = vrot.lane.b32.xlu1 %v1340_v3, %s1277_s0  ;;  %402 = vrot.lane.b32.xlu0 %v1343_v4, %s1277_s0  ;;  %s1283_s17 = smov 17   ;;  %s1285_s18 = smov 16   ;;  %v80_v11 = vshrl.u32 %v70_v10, 7  ;;  %v1424_v12 = vand.u32 127, %v70_v10  ;;  %vm517_vm8 = vcmask 654336   ;;  %vm1064_vm9 = vcmask 1043456  }
  0x1e   :  { %553 = vmatprep.mubr.bf16.mxu0 %v1284_v8  ;;  %596 = vmatprep.mubr.bf16.mxu1 %v1284_v8  ;;  %v416_v17 = vld [vmem:[#allocation6 + $0x20] ss:$8 sm:$0xf]  ;;  %v372_v42 = vld [vmem:[#allocation6 + $0x7] ss:$8 sm:$0xf] }
  0x1f   :  { %1204 = vset.pattern.permute.xlu0 %v1284_v8  ;;  %1205 = vset.pattern.permute.xlu1 %v1284_v8  ;;  %v1426_v13 = vsub.s32 0, %v80_v11  ;;  %v1428_v14 = vsub.s32 1, %v80_v11  ;;  %v1430_v15 = vsub.s32 2, %v80_v11  ;;  %v1432_v16 = vsub.s32 3, %v80_v11 }
  0x20   :  { %vm410_vm0 = vcmp.lt.s32.totalorder %v1424_v12, 111  ;;  %v328_v43 = vld [vmem:[#allocation6 + $0x6] ss:$8 sm:$0xf]  ;;  %vm366_vm1 = vcmp.lt.s32.totalorder %v1424_v12, 112  ;;  %vm322_vm2 = vcmp.lt.s32.totalorder %v1424_v12, 113 }
  0x21   :  { %408 = vrot.lane.b32.xlu1 %v1352_v6, %s1277_s0  ;;  %404 = vrot.lane.b32.xlu0 %v1355_v7, %s1277_s0  ;;  %v429_v20 = vrot.slane %v416_v17, %v1430_v15  ;;  %v421_v21 = vrot.slane %v416_v17, %v1426_v13  ;;  %v425_v22 = vrot.slane %v416_v17, %v1428_v14  ;;  %vm278_vm3 = vcmp.lt.s32.totalorder %v1424_v12, 127  ;;  %v240_v63 = vld [vmem:[#allocation6 + $0x4] ss:$8 sm:$0xf] }
  0x22   :  { %v433_v23 = vrot.slane %v416_v17, %v1432_v16  ;;  %v345_v44 = vrot.slane %v328_v43, %v1432_v16  ;;  %v337_v45 = vrot.slane %v328_v43, %v1428_v14  ;;  %v341_v49 = vrot.slane %v328_v43, %v1430_v15 }
  0x23   :  { %v377_v51 = vrot.slane %v372_v42, %v1426_v13  ;;  %v389_v53 = vrot.slane %v372_v42, %v1432_v16  ;;  %v381_v54 = vrot.slane %v372_v42, %v1428_v14  ;;  %v385_v55 = vrot.slane %v372_v42, %v1430_v15 }
  0x24   :  { %v333_v56 = vrot.slane %v328_v43, %v1426_v13  ;;  %vm159_vm4 = vcmp.lt.s32.totalorder %v1424_v12, 15  ;;  %vm203_vm5 = vcmp.lt.s32.totalorder %v1424_v12, 1  ;;  %vm72_vm6 = vcmp.lt.s32.totalorder %v1424_v12, 17 }
  0x25   :  { %316 = vrot.lane.b32.xlu1 %v1355_v7, %s1278_s1  ;;  %314 = vrot.lane.b32.xlu0 %v1343_v4, %s1278_s1  ;;  %vm115_vm7 = vcmp.lt.s32.totalorder %v1424_v12, 16  ;;  %vm1060_vm10 = vcmask 588800  }
  0x29   :  { %320 = vrot.lane.b32.xlu1 %v1352_v6, %s1278_s1  ;;  %318 = vrot.lane.b32.xlu0 %v1340_v3, %s1278_s1 }
  0x2d   :  { %360 = vrot.lane.b32.xlu1 %v1355_v7, %s1279_s13  ;;  %358 = vrot.lane.b32.xlu0 %v1343_v4, %s1279_s13 }
  0x31   :  { %364 = vrot.lane.b32.xlu1 %v1352_v6, %s1279_s13  ;;  %362 = vrot.lane.b32.xlu0 %v1340_v3, %s1279_s13 }
  0x35   :  { %272 = vrot.lane.b32.xlu1 %v1355_v7, %s1280_s14  ;;  %270 = vrot.lane.b32.xlu0 %v1343_v4, %s1280_s14 }
  0x39   :  { %276 = vrot.lane.b32.xlu1 %v1352_v6, %s1280_s14  ;;  %274 = vrot.lane.b32.xlu0 %v1340_v3, %s1280_s14 }
  0x3d   :  { %153 = vrot.lane.b32.xlu1 %v1355_v7, %s1281_s15  ;;  %151 = vrot.lane.b32.xlu0 %v1343_v4, %s1281_s15 }
  0x41   :  { %157 = vrot.lane.b32.xlu1 %v1352_v6, %s1281_s15  ;;  %155 = vrot.lane.b32.xlu0 %v1340_v3, %s1281_s15 }
  0x45   :  { %197 = vrot.lane.b32.xlu1 %v1355_v7, %s1282_s16  ;;  %195 = vrot.lane.b32.xlu0 %v1343_v4, %s1282_s16 }
  0x49   :  { %201 = vrot.lane.b32.xlu1 %v1352_v6, %s1282_s16  ;;  %199 = vrot.lane.b32.xlu0 %v1340_v3, %s1282_s16 }
  0x4d   :  { %64 = vrot.lane.b32.xlu1 %v1355_v7, %s1283_s17  ;;  %62 = vrot.lane.b32.xlu0 %v1343_v4, %s1283_s17 }
  0x51   :  { %68 = vrot.lane.b32.xlu1 %v1352_v6, %s1283_s17  ;;  %66 = vrot.lane.b32.xlu0 %v1340_v3, %s1283_s17 }
  0x55   :  { %109 = vrot.lane.b32.xlu1 %v1355_v7, %s1285_s18  ;;  %107 = vrot.lane.b32.xlu0 %v1343_v4, %s1285_s18 }
  0x59   :  { %113 = vrot.lane.b32.xlu1 %v1352_v6, %s1285_s18  ;;  %111 = vrot.lane.b32.xlu0 %v1340_v3, %s1285_s18 }
  0x5d   :  { %610 = vperm.xlu0 %1204, %v607_v9  }
  0x8f   :  { %v407_v18 = vpop.permute.xlu1 %406  ;;  %v403_v19 = vpop.permute.xlu0 %402 }
  0x93   :  { %v409_v24 = vpop.permute.xlu1 %408  ;;  %v405_v25 = vpop.permute.xlu0 %404 }
  0x94   :  { %v411_v26 = vsel %vm410_vm0, %v407_v18, %v409_v24  ;;  %v414_v27 = vsel %vm410_vm0, %v409_v24, %v403_v19  ;;  %v412_v28 = vsel %vm410_vm0, %v405_v25, %v407_v18  ;;  %v413_v29 = vsel %vm410_vm0, %v403_v19, %v405_v25  ;;  %v284_v18 = vld [vmem:[#allocation6 + $0x5] ss:$8 sm:$0xf] }
  0x95   :  { %v440_v30 = vmul.f32 %v429_v20, %v411_v26  ;;  %v438_v31 = vmul.f32 %v421_v21, %v413_v29  ;;  %v439_v32 = vmul.f32 %v425_v22, %v412_v28  ;;  %v441_v33 = vmul.f32 %v433_v23, %v414_v27 }
  0x96   :  { %v249_v20 = vrot.slane %v240_v63, %v1428_v14  ;;  %v257_v21 = vrot.slane %v240_v63, %v1432_v16  ;;  %v245_v22 = vrot.slane %v240_v63, %v1426_v13  ;;  %v253_v28 = vrot.slane %v240_v63, %v1430_v15 }
  0x97   :  { %v317_v34 = vpop.permute.xlu1 %316  ;;  %v315_v35 = vpop.permute.xlu0 %314  ;;  %v509_v36 = vpack.c.bf16 %v1345_v5, %v439_v32  ;;  %v511_v37 = vpack.c.bf16 %v1337_v2, %v441_v33  ;;  %v508_v38 = vpack.c.bf16 %v1335_v1, %v438_v31  ;;  %v510_v39 = vpack.c.bf16 %v1333_v0, %v440_v30 }
  0x98   :  { %v325_v58 = vsel %vm322_vm2, %v315_v35, %v317_v34  ;;  %v289_v29 = vrot.slane %v284_v18, %v1426_v13  ;;  %v301_v31 = vrot.slane %v284_v18, %v1432_v16  ;;  %v293_v33 = vrot.slane %v284_v18, %v1428_v14 }
  0x99   :  { %527 = vmatprep.subr.bf16.mxu0 %v509_v36  ;;  %570 = vmatprep.subr.bf16.mxu1 %v511_v37  ;;  %v350_v19 = vmul.f32 %v333_v56, %v325_v58  ;;  %v263_v37 = vmul.f32 %v249_v20, %v1355_v7 }
  0x9a   :  { %528 = vmatpush1.bf16.msra.mxu0 %v508_v38  ;;  %571 = vmatpush1.bf16.msra.mxu1 %v510_v39  ;;  %v265_v38 = vmul.f32 %v257_v21, %v1352_v6  ;;  %v262_v39 = vmul.f32 %v245_v22, %v1343_v4 }
  0x9b   :  { %v321_v40 = vpop.permute.xlu1 %320  ;;  %v319_v41 = vpop.permute.xlu0 %318 }
  0x9c   :  { %v326_v48 = vsel %vm322_vm2, %v321_v40, %v315_v35  ;;  %v324_v50 = vsel %vm322_vm2, %v317_v34, %v319_v41  ;;  %v323_v57 = vsel %vm322_vm2, %v319_v41, %v321_v40  ;;  %v297_v34 = vrot.slane %v284_v18, %v1430_v15 }
  0x9d   :  { %v353_v59 = vmul.f32 %v345_v44, %v326_v48  ;;  %v351_v60 = vmul.f32 %v337_v45, %v324_v50  ;;  %v352_v9 = vmul.f32 %v341_v49, %v323_v57  ;;  %v264_v40 = vmul.f32 %v253_v28, %v1340_v3  ;;  %v165_v3 = vld [vmem:[#allocation6 + $0x2] ss:$8 sm:$0xf] }
  0x9e   :  { %v170_v57 = vrot.slane %v165_v3, %v1426_v13  ;;  %v178_v58 = vrot.slane %v165_v3, %v1430_v15 }
  0x9f   :  { %v361_v46 = vpop.permute.xlu1 %360  ;;  %v359_v47 = vpop.permute.xlu0 %358 }
  0xa0   :  { %v369_v52 = vsel %vm366_vm1, %v359_v47, %v361_v46 }
  0xa1   :  { %v394_v0 = vmul.f32 %v377_v51, %v369_v52  ;;  %v209_v51 = vld [vmem:[#allocation6 + $0x3] ss:$8 sm:$0xf] }
  0xa3   :  { %v365_v61 = vpop.permute.xlu1 %364  ;;  %v363_v62 = vpop.permute.xlu0 %362  ;;  %v504_v30 = vpack.c.bf16 %v394_v0, %v350_v19  ;;  %v214_v0 = vrot.slane %v209_v51, %v1426_v13 }
  0xa4   :  { %v370_v1 = vsel %vm366_vm1, %v365_v61, %v359_v47  ;;  %v367_v2 = vsel %vm366_vm1, %v363_v62, %v365_v61  ;;  %v368_v5 = vsel %vm366_vm1, %v361_v46, %v363_v62 }
  0xa5   :  { %v397_v10 = vmul.f32 %v389_v53, %v370_v1  ;;  %v395_v11 = vmul.f32 %v381_v54, %v368_v5  ;;  %v396_v17 = vmul.f32 %v385_v55, %v367_v2  ;;  %v174_v54 = vrot.slane %v165_v3, %v1428_v14 }
  0xa6   :  { %v218_v55 = vrot.slane %v209_v51, %v1428_v14  ;;  %v222_v1 = vrot.slane %v209_v51, %v1430_v15 }
  0xa7   :  { %v273_v23 = vpop.permute.xlu1 %272  ;;  %v271_v24 = vpop.permute.xlu0 %270  ;;  %v505_v25 = vpack.c.bf16 %v395_v11, %v351_v60  ;;  %v507_v26 = vpack.c.bf16 %v397_v10, %v353_v59  ;;  %v506_v27 = vpack.c.bf16 %v396_v17, %v352_v9  ;;  %v182_v59 = vrot.slane %v165_v3, %v1432_v16 }
  0xa8   :  { %v281_v32 = vsel %vm278_vm3, %v271_v24, %v273_v23  ;;  %v226_v10 = vrot.slane %v209_v51, %v1432_v16 }
  0xa9   :  { %529 = vmatprep.subr.bf16.mxu0 %v505_v25  ;;  %572 = vmatprep.subr.bf16.mxu1 %v507_v26  ;;  %v306_v41 = vmul.f32 %v289_v29, %v281_v32 }
  0xaa   :  { %530 = vmatpush1.bf16.msra.mxu0 %v504_v30  ;;  %573 = vmatpush1.bf16.msra.mxu1 %v506_v27 }
  0xab   :  { %v277_v35 = vpop.permute.xlu1 %276  ;;  %v275_v36 = vpop.permute.xlu0 %274  ;;  %v500_v50 = vpack.c.bf16 %v306_v41, %v262_v39 }
  0xac   :  { %v282_v42 = vsel %vm278_vm3, %v277_v35, %v271_v24  ;;  %v279_v43 = vsel %vm278_vm3, %v275_v36, %v277_v35  ;;  %v280_v44 = vsel %vm278_vm3, %v273_v23, %v275_v36  ;;  %v121_v35 = vld [vmem:[#allocation6 + $0x1] ss:$8 sm:$0xf] }
  0xad   :  { %v309_v45 = vmul.f32 %v301_v31, %v282_v42  ;;  %v307_v46 = vmul.f32 %v293_v33, %v280_v44  ;;  %v308_v47 = vmul.f32 %v297_v34, %v279_v43  ;;  %v77_v34 = vld [vmem:[#allocation6] ss:$8 sm:$0xf]  ;;  %v130_v39 = vrot.slane %v121_v35, %v1428_v14 }
  0xae   :  { %v82_v41 = vrot.slane %v77_v34, %v1426_v13  ;;  %v90_v42 = vrot.slane %v77_v34, %v1430_v15  ;;  %v94_v43 = vrot.slane %v77_v34, %v1432_v16 }
  0xaf   :  { %v154_v7 = vpop.permute.xlu1 %153  ;;  %v152_v48 = vpop.permute.xlu0 %151  ;;  %v501_v6 = vpack.c.bf16 %v307_v46, %v263_v37  ;;  %v503_v49 = vpack.c.bf16 %v309_v45, %v265_v38  ;;  %v502_v4 = vpack.c.bf16 %v308_v47, %v264_v40  ;;  %v86_v38 = vrot.slane %v77_v34, %v1428_v14 }
  0xb0   :  { %v162_v56 = vsel %vm159_vm4, %v152_v48, %v154_v7 }
  0xb1   :  { %531 = vmatprep.subr.bf16.mxu0 %v501_v6  ;;  %574 = vmatprep.subr.bf16.mxu1 %v503_v49  ;;  %v188_v2 = vmul.f32 %v174_v54, %v162_v56 }
  0xb2   :  { %532 = vmatpush1.bf16.msra.mxu0 %v500_v50  ;;  %575 = vmatpush1.bf16.msra.mxu1 %v502_v4  ;;  %v138_v50 = vrot.slane %v121_v35, %v1432_v16 }
  0xb3   :  { %v158_v52 = vpop.permute.xlu1 %157  ;;  %v156_v53 = vpop.permute.xlu0 %155 }
  0xb4   :  { %v163_v62 = vsel %vm159_vm4, %v158_v52, %v152_v48  ;;  %v161_v5 = vsel %vm159_vm4, %v154_v7, %v156_v53  ;;  %v160_v11 = vsel %vm159_vm4, %v156_v53, %v158_v52  ;;  %v126_v7 = vrot.slane %v121_v35, %v1426_v13 }
  0xb5   :  { %v187_v17 = vmul.f32 %v170_v57, %v163_v62  ;;  %v189_v21 = vmul.f32 %v178_v58, %v161_v5  ;;  %v190_v25 = vmul.f32 %v182_v59, %v160_v11  ;;  %v134_v48 = vrot.slane %v121_v35, %v1430_v15 }
  0xb7   :  { %v198_v60 = vpop.permute.xlu1 %197  ;;  %v196_v61 = vpop.permute.xlu0 %195 }
  0xb8   :  { %v206_v63 = vsel %vm203_vm5, %v196_v61, %v198_v60 }
  0xb9   :  { %v232_v9 = vmul.f32 %v218_v55, %v206_v63 }
  0xbb   :  { %v202_v18 = vpop.permute.xlu1 %201  ;;  %v200_v19 = vpop.permute.xlu0 %199  ;;  %v497_v20 = vpack.c.bf16 %v232_v9, %v188_v2  ;;  %v1206_v2 = vld [vmem:[%s1749_s2] sm:$0xff]  }
  0xbc   :  { %v207_v22 = vsel %vm203_vm5, %v202_v18, %v196_v61  ;;  %v204_v23 = vsel %vm203_vm5, %v200_v19, %v202_v18  ;;  %v205_v24 = vsel %vm203_vm5, %v198_v60, %v200_v19 }
  0xbd   :  { %v231_v26 = vmul.f32 %v214_v0, %v207_v22  ;;  %v233_v27 = vmul.f32 %v222_v1, %v205_v24  ;;  %v234_v28 = vmul.f32 %v226_v10, %v204_v23  ;;  %533 = vmatprep.subr.bf16.mxu0 %v497_v20 }
  0xbf   :  { %v65_v29 = vpop.permute.xlu1 %64  ;;  %v63_v30 = vpop.permute.xlu0 %62  ;;  %v496_v31 = vpack.c.bf16 %v231_v26, %v187_v17  ;;  %v499_v32 = vpack.c.bf16 %v234_v28, %v190_v25  ;;  %v498_v33 = vpack.c.bf16 %v233_v27, %v189_v21  ;;  %v621_v25 = vld [vmem:[%s1751_s4] sm:$0xff] }
  0xc0   :  { %v75_v40 = vsel %vm72_vm6, %v63_v30, %v65_v29  ;;  %v1054_v26 = vld [vmem:[%s1753_s6] sm:$0xff] }
  0xc1   :  { %534 = vmatpush1.bf16.msra.mxu0 %v496_v31  ;;  %576 = vmatprep.subr.bf16.mxu1 %v499_v32  ;;  %v100_v6 = vmul.f32 %v86_v38, %v75_v40  ;;  %v967_v27 = vld [vmem:[#allocation6 + $0x20] ss:$8 sm:$0xf] }
  0xc2   :  { %577 = vmatpush1.bf16.msra.mxu1 %v498_v33  ;;  %v976_v31 = vrot.slane %v967_v27, %v1428_v14  ;;  %v980_v38 = vrot.slane %v967_v27, %v1430_v15 }
  0xc3   :  { %v69_v36 = vpop.permute.xlu1 %68  ;;  %v67_v37 = vpop.permute.xlu0 %66 }
  0xc4   :  { %v76_v46 = vsel %vm72_vm6, %v69_v36, %v63_v30  ;;  %v74_v49 = vsel %vm72_vm6, %v65_v29, %v67_v37  ;;  %v73_v3 = vsel %vm72_vm6, %v67_v37, %v69_v36  ;;  %v972_v30 = vrot.slane %v967_v27, %v1426_v13 }
  0xc5   :  { %v99_v51 = vmul.f32 %v82_v41, %v76_v46  ;;  %v101_v55 = vmul.f32 %v90_v42, %v74_v49  ;;  %v102_v59 = vmul.f32 %v94_v43, %v73_v3  ;;  %v883_v3 = vld [vmem:[#allocation6 + $0x6] ss:$8 sm:$0xf] }
  0xc7   :  { %v110_v44 = vpop.permute.xlu1 %109  ;;  %v108_v45 = vpop.permute.xlu0 %107 }
  0xc8   :  { %v118_v47 = vsel %vm115_vm7, %v108_v45, %v110_v44 }
  0xc9   :  { %v144_v4 = vmul.f32 %v130_v39, %v118_v47  ;;  %v984_v39 = vrot.slane %v967_v27, %v1432_v16 }
  0xcb   :  { %v114_v52 = vpop.permute.xlu1 %113  ;;  %v112_v53 = vpop.permute.xlu0 %111  ;;  %v493_v54 = vpack.c.bf16 %v144_v4, %v100_v6 }
  0xcc   :  { %v119_v56 = vsel %vm115_vm7, %v114_v52, %v108_v45  ;;  %v116_v57 = vsel %vm115_vm7, %v112_v53, %v114_v52  ;;  %v117_v58 = vsel %vm115_vm7, %v110_v44, %v112_v53 }
  0xcd   :  { %v143_v60 = vmul.f32 %v126_v7, %v119_v56  ;;  %v145_v61 = vmul.f32 %v134_v48, %v117_v58  ;;  %v146_v62 = vmul.f32 %v138_v50, %v116_v57  ;;  %535 = vmatprep.subr.bf16.mxu0 %v493_v54  ;;  %v888_v54 = vrot.slane %v883_v3, %v1426_v13 }
  0xcf   :  { %v492_v63 = vpack.c.bf16 %v143_v60, %v99_v51  ;;  %v495_v0 = vpack.c.bf16 %v146_v62, %v102_v59  ;;  %v494_v1 = vpack.c.bf16 %v145_v61, %v101_v55  ;;  %v925_v51 = vld [vmem:[#allocation6 + $0x7] ss:$8 sm:$0xf]  ;;  %v892_v55 = vrot.slane %v883_v3, %v1428_v14 }
  0xd0   :  { %v930_v56 = vrot.slane %v925_v51, %v1426_v13  ;;  %v934_v57 = vrot.slane %v925_v51, %v1428_v14  ;;  %v896_v60 = vrot.slane %v883_v3, %v1430_v15  ;;  %v900_v61 = vrot.slane %v883_v3, %v1432_v16 }
  0xd1   :  { %536 = vmatpush1.bf16.msra.mxu0 %v492_v63  ;;  %578 = vmatprep.subr.bf16.mxu1 %v495_v0 }
  0xd2   :  { %579 = vmatpush1.bf16.msra.mxu1 %v494_v1 }
  0xd4   :  { %1184 = vmatmul.mubr.msk.bf16.vlgmr.msra.gmra.mxu0 %vm517_vm8, %v1206_v2 }
  0xd5   :  { %1185 = vmatmul.mubr.msk.bf16.vlgmr.msra.gmra.mxu1 %vm517_vm8, %v1206_v2  ;;  %1109 = vmatprep.mubr.bf16.mxu0 %v1284_v8  ;;  %v938_v2 = vrot.slane %v925_v51, %v1430_v15 }
  0xd6   :  { %1150 = vmatprep.mubr.bf16.mxu1 %v1284_v8 }
  0xd8   :  { %v611_v5 = vpop.permute.xlu0 %610 }
 0x194   :  { %v555_v9 = vpop.f32.mrf.mxu0 }
 0x195   :  { %v613_v10 = vadd.f32 %v611_v5, %v555_v9  ;;  %v598_v11 = vpop.f32.mrf.mxu1  ;;  %v799_v9 = vld [vmem:[#allocation6 + $0x4] ss:$8 sm:$0xf] }
 0x196   :  { %v615_v17 = vadd.f32 %v611_v5, %v598_v11  ;;  %v557_v18 = vpop.f32.mrf.mxu0 }
 0x197   :  { %v1555_v19 = vmax.f32 %v613_v10, 0.0  ;;  %v614_v20 = vadd.f32 %v611_v5, %v557_v18  ;;  %v600_v22 = vpop.f32.mrf.mxu1 }
 0x198   :  { %v1557_v21 = vmax.f32 %v615_v17, 0.0  ;;  %v616_v8 = vadd.f32 %v611_v5, %v600_v22  ;;  %v942_v5 = vrot.slane %v925_v51, %v1432_v16  ;;  %v559_v12 = vpop.f32.mrf.mxu0 }
 0x199   :  { %955 = vrot.lane.b32.xlu1 %v1555_v19, %s1277_s0  ;;  %v1563_v23 = vmax.f32 %v614_v20, 0.0  ;;  %v841_v20 = vld [vmem:[#allocation6 + $0x5] ss:$8 sm:$0xf] }
 0x19a   :  { %959 = vrot.lane.b32.xlu0 %v1557_v21, %s1277_s0  ;;  %v1569_v24 = vmax.f32 %v616_v8, 0.0 }
 0x19d   :  { %957 = vrot.lane.b32.xlu1 %v1563_v23, %s1277_s0 }
 0x19e   :  { %871 = vrot.lane.b32.xlu0 %v1555_v19, %s1278_s1 }
 0x1a1   :  { %961 = vrot.lane.b32.xlu1 %v1569_v24, %s1277_s0 }
 0x1a2   :  { %875 = vrot.lane.b32.xlu0 %v1557_v21, %s1278_s1 }
 0x1a5   :  { %873 = vrot.lane.b32.xlu1 %v1563_v23, %s1278_s1 }
 0x1a6   :  { %913 = vrot.lane.b32.xlu0 %v1555_v19, %s1279_s13 }
 0x1a9   :  { %877 = vrot.lane.b32.xlu1 %v1569_v24, %s1278_s1 }
 0x1aa   :  { %917 = vrot.lane.b32.xlu0 %v1557_v21, %s1279_s13 }
 0x1ad   :  { %915 = vrot.lane.b32.xlu1 %v1563_v23, %s1279_s13 }
 0x1ae   :  { %829 = vrot.lane.b32.xlu0 %v1555_v19, %s1280_s14 }
 0x1b1   :  { %919 = vrot.lane.b32.xlu1 %v1569_v24, %s1279_s13 }
 0x1b2   :  { %833 = vrot.lane.b32.xlu0 %v1557_v21, %s1280_s14 }
 0x1b5   :  { %831 = vrot.lane.b32.xlu1 %v1563_v23, %s1280_s14 }
 0x1b6   :  { %715 = vrot.lane.b32.xlu0 %v1555_v19, %s1281_s15 }
 0x1b9   :  { %835 = vrot.lane.b32.xlu1 %v1569_v24, %s1280_s14 }
 0x1ba   :  { %719 = vrot.lane.b32.xlu0 %v1557_v21, %s1281_s15 }
 0x1bd   :  { %717 = vrot.lane.b32.xlu1 %v1563_v23, %s1281_s15 }
 0x1be   :  { %757 = vrot.lane.b32.xlu0 %v1555_v19, %s1282_s16 }
 0x1c1   :  { %721 = vrot.lane.b32.xlu1 %v1569_v24, %s1281_s15 }
 0x1c2   :  { %761 = vrot.lane.b32.xlu0 %v1557_v21, %s1282_s16 }
 0x1c5   :  { %759 = vrot.lane.b32.xlu1 %v1563_v23, %s1282_s16 }
 0x1c6   :  { %631 = vrot.lane.b32.xlu0 %v1555_v19, %s1283_s17 }
 0x1c9   :  { %763 = vrot.lane.b32.xlu1 %v1569_v24, %s1282_s16 }
 0x1ca   :  { %635 = vrot.lane.b32.xlu0 %v1557_v21, %s1283_s17 }
 0x1cd   :  { %633 = vrot.lane.b32.xlu1 %v1563_v23, %s1283_s17 }
 0x1ce   :  { %673 = vrot.lane.b32.xlu0 %v1555_v19, %s1285_s18 }
 0x1d1   :  { %637 = vrot.lane.b32.xlu1 %v1569_v24, %s1283_s17 }
 0x1d2   :  { %677 = vrot.lane.b32.xlu0 %v1557_v21, %s1285_s18 }
 0x1d5   :  { %675 = vrot.lane.b32.xlu1 %v1563_v23, %s1285_s18 }
 0x1d6   :  { %624 = vperm.xlu0 %1204, %v621_v25  }
 0x1d9   :  { %679 = vrot.lane.b32.xlu1 %v1569_v24, %s1285_s18 }
 0x1dd   :  { %1057 = vperm.xlu1 %1205, %v1054_v26  }
 0x20b   :  { %v956_v28 = vpop.permute.xlu1 %955 }
 0x20c   :  { %v960_v29 = vpop.permute.xlu0 %959 }
 0x20f   :  { %v958_v32 = vpop.permute.xlu1 %957 }
 0x210   :  { %v964_v33 = vsel %vm410_vm0, %v958_v32, %v960_v29  ;;  %v965_v34 = vsel %vm410_vm0, %v956_v28, %v958_v32  ;;  %v872_v35 = vpop.permute.xlu0 %871 }
 0x211   :  { %v989_v36 = vmul.f32 %v972_v30, %v965_v34  ;;  %v990_v37 = vmul.f32 %v976_v31, %v964_v33  ;;  %v846_v33 = vrot.slane %v841_v20, %v1426_v13  ;;  %v850_v34 = vrot.slane %v841_v20, %v1428_v14 }
 0x213   :  { %v1050_v40 = vpack.c.bf16 %v989_v36, %v989_v36  ;;  %v1051_v41 = vpack.c.bf16 %v990_v37, %v990_v37  ;;  %v962_v42 = vpop.permute.xlu1 %961 }
 0x214   :  { %v963_v43 = vsel %vm410_vm0, %v960_v29, %v962_v42  ;;  %v966_v44 = vsel %vm410_vm0, %v962_v42, %v956_v28  ;;  %v876_v45 = vpop.permute.xlu0 %875  ;;  %v804_v28 = vrot.slane %v799_v9, %v1426_v13  ;;  %v808_v29 = vrot.slane %v799_v9, %v1428_v14 }
 0x215   :  { %v991_v46 = vmul.f32 %v980_v38, %v963_v43  ;;  %v992_v47 = vmul.f32 %v984_v39, %v966_v44  ;;  %1186 = vmatprep.subr.msk.bf16.mxu0 %vm1064_vm9, %v1051_v41  ;;  %v1066_v7 = vsel %vm1064_vm9, %v1050_v40, 0  ;;  %v812_v42 = vrot.slane %v799_v9, %v1430_v15 }
 0x216   :  { %1084 = vmatpush1.bf16.msra.mxu0 %v1066_v7  ;;  %v816_v43 = vrot.slane %v799_v9, %v1432_v16  ;;  %v821_v44 = vmul.f32 %v804_v28, %v1555_v19  ;;  %v822_v7 = vmul.f32 %v808_v29, %v1563_v23 }
 0x217   :  { %v1052_v48 = vpack.c.bf16 %v991_v46, %v991_v46  ;;  %v1053_v6 = vpack.c.bf16 %v992_v47, %v992_v47  ;;  %v874_v49 = vpop.permute.xlu1 %873  ;;  %v823_v23 = vmul.f32 %v812_v42, %v1557_v21 }
 0x218   :  { %v914_v4 = vpop.permute.xlu0 %913  ;;  %v880_v58 = vsel %vm322_vm2, %v874_v49, %v876_v45  ;;  %v881_v59 = vsel %vm322_vm2, %v872_v35, %v874_v49  ;;  %v854_v49 = vrot.slane %v841_v20, %v1430_v15 }
 0x219   :  { %1188 = vmatprep.subr.msk.bf16.mxu1 %vm1064_vm9, %v1053_v6  ;;  %v1072_v50 = vsel %vm1064_vm9, %v1052_v48, 0  ;;  %v905_v10 = vmul.f32 %v888_v54, %v881_v59  ;;  %v906_v11 = vmul.f32 %v892_v55, %v880_v58 }
 0x21a   :  { %1125 = vmatpush1.bf16.msra.mxu1 %v1072_v50 }
 0x21b   :  { %v878_v52 = vpop.permute.xlu1 %877 }
 0x21c   :  { %v918_v53 = vpop.permute.xlu0 %917  ;;  %v879_v22 = vsel %vm322_vm2, %v876_v45, %v878_v52  ;;  %v882_v8 = vsel %vm322_vm2, %v878_v52, %v872_v35 }
 0x21d   :  { %v907_v36 = vmul.f32 %v896_v60, %v879_v22  ;;  %v908_v35 = vmul.f32 %v900_v61, %v882_v8  ;;  %v727_v61 = vld [vmem:[#allocation6 + $0x2] ss:$8 sm:$0xf] }
 0x21e   :  { %v744_v9 = vrot.slane %v727_v61, %v1432_v16 }
 0x21f   :  { %v916_v62 = vpop.permute.xlu1 %915 }
 0x220   :  { %v922_v63 = vsel %vm366_vm1, %v916_v62, %v918_v53  ;;  %v923_v0 = vsel %vm366_vm1, %v914_v4, %v916_v62  ;;  %v830_v1 = vpop.permute.xlu0 %829  ;;  %v769_v62 = vld [vmem:[#allocation6 + $0x3] ss:$8 sm:$0xf] }
 0x221   :  { %v947_v17 = vmul.f32 %v930_v56, %v923_v0  ;;  %v948_v18 = vmul.f32 %v934_v57, %v922_v63  ;;  %v824_v56 = vmul.f32 %v816_v43, %v1569_v24  ;;  %v778_v21 = vrot.slane %v769_v62, %v1428_v14 }
 0x222   :  { %v732_v24 = vrot.slane %v727_v61, %v1426_v13 }
 0x223   :  { %v1046_v25 = vpack.c.bf16 %v947_v17, %v905_v10  ;;  %v920_v26 = vpop.permute.xlu1 %919  ;;  %v1047_v27 = vpack.c.bf16 %v948_v18, %v906_v11  ;;  %v782_v10 = vrot.slane %v769_v62, %v1430_v15  ;;  %v774_v18 = vrot.slane %v769_v62, %v1426_v13 }
 0x224   :  { %v921_v30 = vsel %vm366_vm1, %v918_v53, %v920_v26  ;;  %v924_v31 = vsel %vm366_vm1, %v920_v26, %v914_v4  ;;  %v834_v32 = vpop.permute.xlu0 %833  ;;  %v858_v4 = vrot.slane %v841_v20, %v1432_v16  ;;  %v740_v26 = vrot.slane %v727_v61, %v1430_v15 }
 0x225   :  { %v949_v37 = vmul.f32 %v938_v2, %v921_v30  ;;  %v950_v38 = vmul.f32 %v942_v5, %v924_v31  ;;  %1085 = vmatprep.subr.bf16.mxu0 %v1047_v27 }
 0x226   :  { %1086 = vmatpush1.bf16.msra.mxu0 %v1046_v25  ;;  %v786_v25 = vrot.slane %v769_v62, %v1432_v16 }
 0x227   :  { %v1048_v39 = vpack.c.bf16 %v949_v37, %v907_v36  ;;  %v832_v40 = vpop.permute.xlu1 %831  ;;  %v1049_v41 = vpack.c.bf16 %v950_v38, %v908_v35 }
 0x228   :  { %v838_v45 = vsel %vm278_vm3, %v832_v40, %v834_v32  ;;  %v839_v46 = vsel %vm278_vm3, %v830_v1, %v832_v40  ;;  %v716_v47 = vpop.permute.xlu0 %715 }
 0x229   :  { %v863_v48 = vmul.f32 %v846_v33, %v839_v46  ;;  %v864_v6 = vmul.f32 %v850_v34, %v838_v45  ;;  %1126 = vmatprep.subr.bf16.mxu1 %v1049_v41  ;;  %v643_v45 = vld [vmem:[#allocation6] ss:$8 sm:$0xf] }
 0x22a   :  { %1127 = vmatpush1.bf16.msra.mxu1 %v1048_v39 }
 0x22b   :  { %v1042_v50 = vpack.c.bf16 %v863_v48, %v821_v44  ;;  %v836_v3 = vpop.permute.xlu1 %835  ;;  %v1043_v19 = vpack.c.bf16 %v864_v6, %v822_v7  ;;  %v652_v48 = vrot.slane %v643_v45, %v1428_v14 }
 0x22c   :  { %v837_v51 = vsel %vm278_vm3, %v834_v32, %v836_v3  ;;  %v840_v52 = vsel %vm278_vm3, %v836_v3, %v830_v1  ;;  %v720_v53 = vpop.permute.xlu0 %719  ;;  %v736_v1 = vrot.slane %v727_v61, %v1428_v14  ;;  %v660_v3 = vrot.slane %v643_v45, %v1432_v16 }
 0x22d   :  { %v865_v54 = vmul.f32 %v854_v49, %v837_v51  ;;  %v866_v55 = vmul.f32 %v858_v4, %v840_v52  ;;  %1087 = vmatprep.subr.bf16.mxu0 %v1043_v19  ;;  %v648_v4 = vrot.slane %v643_v45, %v1426_v13 }
 0x22e   :  { %1088 = vmatpush1.bf16.msra.mxu0 %v1042_v50 }
 0x22f   :  { %v1044_v57 = vpack.c.bf16 %v865_v54, %v823_v23  ;;  %v718_v58 = vpop.permute.xlu1 %717  ;;  %v1045_v59 = vpack.c.bf16 %v866_v55, %v824_v56  ;;  %v656_v56 = vrot.slane %v643_v45, %v1430_v15 }
 0x230   :  { %v758_v60 = vpop.permute.xlu0 %757  ;;  %v725_v2 = vsel %vm159_vm4, %v716_v47, %v718_v58  ;;  %v724_v29 = vsel %vm159_vm4, %v718_v58, %v720_v53 }
 0x231   :  { %1128 = vmatprep.subr.bf16.mxu1 %v1045_v59  ;;  %v750_v20 = vmul.f32 %v736_v1, %v725_v2  ;;  %v751_v40 = vmul.f32 %v740_v26, %v724_v29 }
 0x232   :  { %1129 = vmatpush1.bf16.msra.mxu1 %v1044_v57 }
 0x233   :  { %v722_v63 = vpop.permute.xlu1 %721 }
 0x234   :  { %v762_v0 = vpop.permute.xlu0 %761  ;;  %v723_v27 = vsel %vm159_vm4, %v720_v53, %v722_v63  ;;  %v726_v28 = vsel %vm159_vm4, %v722_v63, %v716_v47  ;;  %v685_v47 = vld [vmem:[#allocation6 + $0x1] ss:$8 sm:$0xf] }
 0x235   :  { %v749_v35 = vmul.f32 %v732_v24, %v726_v28  ;;  %v752_v37 = vmul.f32 %v744_v9, %v723_v27  ;;  %v694_v6 = vrot.slane %v685_v47, %v1428_v14  ;;  %v698_v51 = vrot.slane %v685_v47, %v1430_v15  ;;  %v997_v9 = vld [vmem:[%s1752_s5] sm:$0xf]  ;;  %s1286_s5 = smov [#allocation8]  }
 0x236   :  { %v690_v53 = vrot.slane %v685_v47, %v1426_v13  ;;  %v702_v55 = vrot.slane %v685_v47, %v1432_v16  ;;  %s1173_s25 = sshll.u32 %s1286_s5, 4  ;;  %s1174_s25 = int_to_ptr.vmem [resolvable:$true] %s1173_s25 }
 0x237   :  { %v760_v5 = vpop.permute.xlu1 %759  ;;  %s1247_s26 = scalar_lea.vmem %s1174_s25, 512  ;;  %p1252_p11 = scmp.lt.s32.totalorder %s1174_s25, %s1174_s25 }
 0x238   :  { %v767_v11 = vsel %vm203_vm5, %v758_v60, %v760_v5  ;;  %v632_v17 = vpop.permute.xlu0 %631  ;;  %v766_v22 = vsel %vm203_vm5, %v760_v5, %v762_v0  ;;  %p1248_p10 = scmp.ne.s32.totalorder %s1174_s25, %s1247_s26  ;;  %p1253_p12 = scmp.lt.s32.totalorder %s1247_s26, %s1247_s26 }
 0x239   :  { %v792_v8 = vmul.f32 %v778_v21, %v767_v11  ;;  %v793_v32 = vmul.f32 %v782_v10, %v766_v22  ;;  %v602_v10 = vpop.f32.mrf.mxu1  ;;  %v561_v11 = vpop.f32.mrf.mxu0 }
 0x23a   :  { %p1254_p13 = por %p1253_p12, %p1252_p11 }
 0x23b   :  { %v764_v30 = vpop.permute.xlu1 %763  ;;  %v1039_v31 = vpack.c.bf16 %v792_v8, %v750_v20  ;;  %v1040_v44 = vpack.c.bf16 %v793_v32, %v751_v40  ;;  %v604_v20 = vpop.f32.mrf.mxu1 }
 0x23c   :  { %v765_v33 = vsel %vm203_vm5, %v762_v0, %v764_v30  ;;  %v768_v34 = vsel %vm203_vm5, %v764_v30, %v758_v60  ;;  %v636_v36 = vpop.permute.xlu0 %635  ;;  %p1255_p0 = pnand %p1254_p13, %p1248_p10 }
 0x23d   :  { %v791_v38 = vmul.f32 %v774_v18, %v768_v34  ;;  %v794_v39 = vmul.f32 %v786_v25, %v765_v33  ;;  %1089 = vmatprep.subr.bf16.mxu0 %v1039_v31 }
 0x23f   :  { %v1038_v41 = vpack.c.bf16 %v791_v38, %v749_v35  ;;  %v634_v42 = vpop.permute.xlu1 %633  ;;  %v1041_v43 = vpack.c.bf16 %v794_v39, %v752_v37 }
 0x240   :  { %v674_v46 = vpop.permute.xlu0 %673  ;;  %v641_v49 = vsel %vm72_vm6, %v632_v17, %v634_v42  ;;  %v640_v59 = vsel %vm72_vm6, %v634_v42, %v636_v36 }
 0x241   :  { %1090 = vmatpush1.bf16.msra.mxu0 %v1038_v41  ;;  %1130 = vmatprep.subr.bf16.mxu1 %v1041_v43  ;;  %v666_v23 = vmul.f32 %v652_v48, %v641_v49  ;;  %v667_v21 = vmul.f32 %v656_v56, %v640_v59 }
 0x242   :  { %1131 = vmatpush1.bf16.msra.mxu1 %v1040_v44 }
 0x243   :  { %v638_v7 = vpop.permute.xlu1 %637 }
 0x244   :  { %v678_v19 = vpop.permute.xlu0 %677  ;;  %v639_v57 = vsel %vm72_vm6, %v636_v36, %v638_v7  ;;  %v642_v58 = vsel %vm72_vm6, %v638_v7, %v632_v17 }
 0x245   :  { %v665_v63 = vmul.f32 %v648_v4, %v642_v58  ;;  %v668_v15 = vmul.f32 %v660_v3, %v639_v57 }
 0x247   :  { %v676_v50 = vpop.permute.xlu1 %675 }
 0x248   :  { %v683_v52 = vsel %vm115_vm7, %v674_v46, %v676_v50  ;;  %v682_v14 = vsel %vm115_vm7, %v676_v50, %v678_v19 }
 0x249   :  { %v708_v54 = vmul.f32 %v694_v6, %v683_v52  ;;  %v709_v61 = vmul.f32 %v698_v51, %v682_v14 }
 0x24b   :  { %v680_v60 = vpop.permute.xlu1 %679  ;;  %v1035_v13 = vpack.c.bf16 %v708_v54, %v666_v23  ;;  %v1036_v5 = vpack.c.bf16 %v709_v61, %v667_v21 }
 0x24c   :  { %v681_v62 = vsel %vm115_vm7, %v678_v19, %v680_v60  ;;  %v684_v16 = vsel %vm115_vm7, %v680_v60, %v674_v46 }
 0x24d   :  { %v707_v0 = vmul.f32 %v690_v53, %v684_v16  ;;  %v710_v1 = vmul.f32 %v702_v55, %v681_v62  ;;  %1091 = vmatprep.subr.bf16.mxu0 %v1035_v13 }
 0x24f   :  { %v1034_v2 = vpack.c.bf16 %v707_v0, %v665_v63  ;;  %v1037_v24 = vpack.c.bf16 %v710_v1, %v668_v15 }
 0x251   :  { %1092 = vmatpush1.bf16.msra.mxu0 %v1034_v2  ;;  %1132 = vmatprep.subr.bf16.mxu1 %v1037_v24  ;;  %v625_v17 = vpop.permute.xlu0 %624 }
 0x252   :  { %1133 = vmatpush1.bf16.msra.mxu1 %v1036_v5  ;;  %v627_v8 = vadd.f32 %v625_v17, %v559_v12  ;;  %v629_v27 = vadd.f32 %v625_v17, %v602_v10  ;;  %v628_v30 = vadd.f32 %v625_v17, %v561_v11  ;;  %v630_v34 = vadd.f32 %v625_v17, %v604_v20 }
 0x254   :  { %1187 = vmatmul.mubr.msk.bf16.vlgmr.msra.gmra.mxu0 %vm1060_vm10, %v997_v9 }
 0x255   :  { %1189 = vmatmul.mubr.msk.bf16.vlgmr.msra.gmra.mxu1 %vm1060_vm10, %v997_v9 }
 0x258   :  { %v1058_v18 = vpop.permute.xlu1 %1057 }
 0x314   :  { %v1111_v22 = vpop.f32.mrf.mxu0 }
 0x315   :  { %v1112_v25 = vadd.f32 %v1111_v22, %v1058_v18  ;;  %v1152_v26 = vpop.f32.mrf.mxu1 }
 0x316   :  { %v1153_v28 = vadd.f32 %v1152_v26, %v1058_v18  ;;  %v1113_v29 = vpop.f32.mrf.mxu0 }
 0x317   :  { %v1159_v31 = vadd.f32 %v1112_v25, %v627_v8  ;;  %v1114_v32 = vadd.f32 %v1113_v29, %v1058_v18  ;;  %v1154_v33 = vpop.f32.mrf.mxu1 }
 0x318   :  { %v1161_v36 = vadd.f32 %v1153_v28, %v629_v27  ;;  %v1155_v35 = vadd.f32 %v1154_v33, %v1058_v18  ;;  %v1115_v37 = vpop.f32.mrf.mxu0 }
 0x319   :  { %1163 = vst [vmem:[#allocation8] sm:$0xff] %v1159_v31  ;;  %v1160_v38 = vadd.f32 %v1114_v32, %v628_v30  ;;  %v1156_v39 = vpop.f32.mrf.mxu1 }
 0x31a   :  { %1165 = vst [vmem:[#allocation8 + $0x10] sm:$0xff] %v1161_v36  ;;  %v1162_v40 = vadd.f32 %v1155_v35, %v630_v34  ;;  %v1116_v41 = vpop.f32.mrf.mxu0 }
 0x31b   :  { %1164 = vst [vmem:[#allocation8 + $0x8] sm:$0xff] %v1160_v38  ;;  %v1157_v42 = vpop.f32.mrf.mxu1 }
 0x31c   :  { %1166 = vst [vmem:[#allocation8 + $0x18] sm:$0xff] %v1162_v40 }
 0x31d   :  { %1258 = shalt.err (!%p1255_p0)
}
 0x31e   :  { %1176 = dma.vmem_to_hbm [thread:$0]  %s1174_s25, 512, %s1754_s7, [#allocation5]  }
 0x31f   :  { %1271 = dma.done.wait [#allocation5], 512  }
 0x320   :  { %1272 = vsyncadd [#allocation5], 4294966784 }
 0x321   :  { %1180 = vsyncpa [#allocation4], 1 }
 0x322   :  { %1181 = vsyncpa [#allocation7], 1 }
 0x323   :  { %1182 = vsyncpa [#allocation5], 1 }

</bundles_post_ra>
